<compile_context>
chip_gen: v7x
topology: tpu7x:2x2x1
jax: 0.10.0
libtpu: 0.0.40
codegen_flags: <defaults>
</compile_context>

<pallas_src>
import jax
import jax.numpy as jnp
from jax import lax
from jax.experimental import pallas as pl
from jax.experimental.pallas import tpu as pltpu


# ----------------------------------------------------------------------------
# Pallas kernel: fused gather + DistMult scores + margin-ranking loss
# ----------------------------------------------------------------------------
def _make_distmult_kernel(batch: int, tile: int):
    inv_b = 1.0 / float(batch)

    def kernel(pos_ref, neg_ref,        # SMEM scalar-prefetch: flat int32 (B_pad*3,)
               ent_ref, rel_ref,        # VMEM-resident embedding tables
               loss_ref,                # (1, 1) f32 output, resident accumulator
               pp_ref, pn_ref):         # (tile, D) f32 product slabs (scratch)
        step = pl.program_id(0)
        base = step * tile

        @pl.when(step == 0)
        def _():
            loss_ref[...] = jnp.zeros_like(loss_ref)

        def gather_row(tbl_ref, idx_ref, triple, col):
            idx = idx_ref[triple * 3 + col]                     # scalar from SMEM
            return tbl_ref[pl.ds(idx, 1), :].astype(jnp.float32)  # (1, D)

        # Build (tile, D) product slabs: one triple per (unrolled) iteration.
        for j in range(tile):
            t = base + j
            hp = gather_row(ent_ref, pos_ref, t, 0)
            rp = gather_row(rel_ref, pos_ref, t, 1)
            tp = gather_row(ent_ref, pos_ref, t, 2)
            pp_ref[pl.ds(j, 1), :] = hp * rp * tp

            hn = gather_row(ent_ref, neg_ref, t, 0)
            rn = gather_row(rel_ref, neg_ref, t, 1)
            tn = gather_row(ent_ref, neg_ref, t, 2)
            pn_ref[pl.ds(j, 1), :] = hn * rn * tn

        # score(h, r, t) = sum_d h[d] * r[d] * t[d], batched over the tile.
        pos_s = jnp.sum(pp_ref[...], axis=-1, keepdims=True)    # (tile, 1)
        neg_s = jnp.sum(pn_ref[...], axis=-1, keepdims=True)    # (tile, 1)

        # MarginRankingLoss(margin=1.0), target = -1, reduction = 'mean':
        #   loss = mean_i max(0, pos_i - neg_i + 1)
        # Mask out padded triples (when B is not a multiple of the tile).
        ids = base + lax.broadcasted_iota(jnp.int32, (tile, 1), 0)
        contrib = jnp.where(ids < batch,
                            jnp.maximum(pos_s - neg_s + 1.0, 0.0),
                            0.0)
        loss_ref[...] += jnp.sum(contrib, axis=0, keepdims=True)

        @pl.when(step == pl.num_programs(0) - 1)
        def _():
            loss_ref[...] = loss_ref[...] * inv_b

    return kernel


def distmult_loss_pallas(entities, relations, positive_triples, negative_triples,
                         *, tile: int = 8):
    B = positive_triples.shape[0]
    E, D = entities.shape
    R = relations.shape[0]

    n_tiles = pl.cdiv(B, tile)
    b_pad = n_tiles * tile

    pos = positive_triples.astype(jnp.int32)
    neg = negative_triples.astype(jnp.int32)
    if b_pad != B:
        pad = ((0, b_pad - B), (0, 0))
        pos = jnp.pad(pos, pad)   # padded rows gather row 0; masked in-kernel
        neg = jnp.pad(neg, pad)
    # Flatten indices to 1-D so the SMEM footprint is next_pow2(4*3*B_pad)
    # bytes instead of an (8, 128)-padded 2-D SMEM slab.
    pos_flat = pos.reshape(-1)
    neg_flat = neg.reshape(-1)

    grid_spec = pltpu.PrefetchScalarGridSpec(
        num_scalar_prefetch=2,
        grid=(n_tiles,),
        in_specs=[
            # Full tables, constant block index -> DMA'd once, VMEM-resident.
            pl.BlockSpec((E, D), lambda i, p, n: (0, 0)),   # entity table
            pl.BlockSpec((R, D), lambda i, p, n: (0, 0)),   # relation table
        ],
        out_specs=pl.BlockSpec((1, 1), lambda i, p, n: (0, 0)),
        scratch_shapes=[pltpu.VMEM((tile, D), jnp.float32),   # positive products
                        pltpu.VMEM((tile, D), jnp.float32)],  # negative products
    )

    loss = pl.pallas_call(
        _make_distmult_kernel(B, tile),
        out_shape=jax.ShapeDtypeStruct((1, 1), jnp.float32),
        grid_spec=grid_spec,
        compiler_params=pltpu.CompilerParams(
            dimension_semantics=("arbitrary",)),
    )(pos_flat, neg_flat, entities, relations)
    return loss[0, 0]


# ----------------------------------------------------------------------------
# DistMult "module": parameter construction + forward wrapper
# ----------------------------------------------------------------------------
def init_distmult_params(key, entity_size, relation_size, dim,
                         dtype=jnp.float32):
    # nn.init.xavier_normal_ on an [num_embeddings, dim] weight:
    #   std = sqrt(2 / (num_embeddings + dim))
    k_e, k_r = jax.random.split(key)
    ent_std = (2.0 / (entity_size + dim)) ** 0.5
    rel_std = (2.0 / (relation_size + dim)) ** 0.5
    entities = (jax.random.normal(k_e, (entity_size, dim), jnp.float32)
                * ent_std).astype(dtype)
    relations = (jax.random.normal(k_r, (relation_size, dim), jnp.float32)
                 * rel_std).astype(dtype)
    return entities, relations


def distmult_forward(entities, relations, positive_triples, negative_triples):
    """positive_triples / negative_triples: int32 [B, 3] = (head, relation, tail)."""
    return distmult_loss_pallas(entities, relations,
                                positive_triples, negative_triples)


# ----------------------------------------------------------------------------
# main
# ----------------------------------------------------------------------------
if __name__ == "__main__":
    entity_size = 16
    relation_size = 4
    dim = 128          # lane-dense embedding dim (multiple of 128)
    batch = 20         # deliberately NOT a multiple of the tile -> exercises masking

    key = jax.random.PRNGKey(0)
    k_params, k_pos, k_neg = jax.random.split(key, 3)

    entities, relations = init_distmult_params(
        k_params, entity_size, relation_size, dim)

    # triples: columns = (head_idx, relation_idx, tail_idx)
    kp_h, kp_r, kp_t = jax.random.split(k_pos, 3)
    kn_h, kn_r, kn_t = jax.random.split(k_neg, 3)
    positive_triples = jnp.stack([
        jax.random.randint(kp_h, (batch,), 0, entity_size),
        jax.random.randint(kp_r, (batch,), 0, relation_size),
        jax.random.randint(kp_t, (batch,), 0, entity_size),
    ], axis=1).astype(jnp.int32)
    negative_triples = jnp.stack([
        jax.random.randint(kn_h, (batch,), 0, entity_size),
        jax.random.randint(kn_r, (batch,), 0, relation_size),
        jax.random.randint(kn_t, (batch,), 0, entity_size),
    ], axis=1).astype(jnp.int32)

    loss = distmult_forward(entities, relations,
                            positive_triples, negative_triples)
    loss = jax.block_until_ready(loss)

    # pure-JAX reference check
    def ref_loss():
        def score(tr):
            h = entities[tr[:, 0]].astype(jnp.float32)
            r = relations[tr[:, 1]].astype(jnp.float32)
            t = entities[tr[:, 2]].astype(jnp.float32)
            return jnp.sum(h * r * t, axis=-1)
        pos = score(positive_triples)
        neg = score(negative_triples)
        return jnp.mean(jnp.maximum(pos - neg + 1.0, 0.0))

    ref = jax.block_until_ready(ref_loss())
    assert jnp.allclose(loss, ref, atol=1e-5, rtol=1e-5), (loss, ref)

    print("KERNEL_OK")
</pallas_src>

<mosaic_0001>
module attributes {stable_mosaic.version = 11 : i64} {
  func.func @kernel(%arg0: i32, %arg1: memref<72xi32, #tpu.memory_space<smem>>, %arg2: memref<72xi32, #tpu.memory_space<smem>>, %arg3: memref<16x128xf32, #tpu.memory_space<vmem>>, %arg4: memref<4x128xf32, #tpu.memory_space<vmem>>, %arg5: memref<1x1xf32, #tpu.memory_space<vmem>>, %arg6: memref<8x128xf32, #tpu.memory_space<vmem>>, %arg7: memref<8x128xf32, #tpu.memory_space<vmem>>) attributes {dimension_semantics = [#tpu.dimension_semantics<arbitrary>], iteration_bounds = array<i64: 3>, scalar_prefetch = 2 : i64, scratch_operands = 2 : i64, tpu.core_type = #tpu.core_type<tc>, window_params = [{pipeline_mode = #tpu.pipeline_mode<synchronous>, transform_indices = @transform_0, window_bounds = array<i64: 16, 128>}, {pipeline_mode = #tpu.pipeline_mode<synchronous>, transform_indices = @transform_1, window_bounds = array<i64: 4, 128>}, {pipeline_mode = #tpu.pipeline_mode<synchronous>, transform_indices = @transform_2, window_bounds = array<i64: 1, 1>}]} {
    %c8_i32 = arith.constant 8 : i32
    %0 = arith.muli %arg0, %c8_i32 : i32
    %c0_i32 = arith.constant 0 : i32
    %1 = arith.cmpi eq, %arg0, %c0_i32 : i32
    %2 = arith.extui %1 : i1 to i32
    %c0_i32_0 = arith.constant 0 : i32
    %3 = arith.cmpi ne, %2, %c0_i32_0 : i32
    scf.if %3 {
      %cst_185 = arith.constant 0.000000e+00 : f32
      %374 = vector.broadcast %cst_185 : f32 to vector<1x1xf32>
      %c0_186 = arith.constant 0 : index
      %c0_187 = arith.constant 0 : index
      %375 = vector.load %arg5[%c0_186, %c0_187] : memref<1x1xf32, #tpu.memory_space<vmem>>, vector<1x1xf32>
      tpu.vector_store %arg5[%c0_186, %c0_187], %374 {strides = array<i32>} : memref<1x1xf32, #tpu.memory_space<vmem>>, vector<1x1xf32>,
    } else {
    }
    %c0_i32_1 = arith.constant 0 : i32
    %4 = arith.addi %0, %c0_i32_1 : i32
    %c3_i32 = arith.constant 3 : i32
    %5 = arith.muli %4, %c3_i32 : i32
    %c0_i32_2 = arith.constant 0 : i32
    %6 = arith.addi %5, %c0_i32_2 : i32
    %7 = arith.index_cast %6 : i32 to index
    %8 = memref.load %arg1[%7] : memref<72xi32, #tpu.memory_space<smem>>
    %9 = arith.index_cast %8 : i32 to index
    %c0 = arith.constant 0 : index
    %10 = vector.load %arg3[%9, %c0] : memref<16x128xf32, #tpu.memory_space<vmem>>, vector<1x128xf32>
    %c3_i32_3 = arith.constant 3 : i32
    %11 = arith.muli %4, %c3_i32_3 : i32
    %c1_i32 = arith.constant 1 : i32
    %12 = arith.addi %11, %c1_i32 : i32
    %13 = arith.index_cast %12 : i32 to index
    %14 = memref.load %arg1[%13] : memref<72xi32, #tpu.memory_space<smem>>
    %15 = arith.index_cast %14 : i32 to index
    %c0_4 = arith.constant 0 : index
    %16 = vector.load %arg4[%15, %c0_4] : memref<4x128xf32, #tpu.memory_space<vmem>>, vector<1x128xf32>
    %c3_i32_5 = arith.constant 3 : i32
    %17 = arith.muli %4, %c3_i32_5 : i32
    %c2_i32 = arith.constant 2 : i32
    %18 = arith.addi %17, %c2_i32 : i32
    %19 = arith.index_cast %18 : i32 to index
    %20 = memref.load %arg1[%19] : memref<72xi32, #tpu.memory_space<smem>>
    %21 = arith.index_cast %20 : i32 to index
    %c0_6 = arith.constant 0 : index
    %22 = vector.load %arg3[%21, %c0_6] : memref<16x128xf32, #tpu.memory_space<vmem>>, vector<1x128xf32>
    %23 = arith.mulf %10, %16 : vector<1x128xf32>
    %24 = arith.mulf %23, %22 : vector<1x128xf32>
    %c0_7 = arith.constant 0 : index
    %c0_8 = arith.constant 0 : index
    %25 = vector.load %arg6[%c0_7, %c0_8] : memref<8x128xf32, #tpu.memory_space<vmem>>, vector<1x128xf32>
    tpu.vector_store %arg6[%c0_7, %c0_8], %24 {strides = array<i32>} : memref<8x128xf32, #tpu.memory_space<vmem>>, vector<1x128xf32>,
    %c3_i32_9 = arith.constant 3 : i32
    %26 = arith.muli %4, %c3_i32_9 : i32
    %c0_i32_10 = arith.constant 0 : i32
    %27 = arith.addi %26, %c0_i32_10 : i32
    %28 = arith.index_cast %27 : i32 to index
    %29 = memref.load %arg2[%28] : memref<72xi32, #tpu.memory_space<smem>>
    %30 = arith.index_cast %29 : i32 to index
    %c0_11 = arith.constant 0 : index
    %31 = vector.load %arg3[%30, %c0_11] : memref<16x128xf32, #tpu.memory_space<vmem>>, vector<1x128xf32>
    %c3_i32_12 = arith.constant 3 : i32
    %32 = arith.muli %4, %c3_i32_12 : i32
    %c1_i32_13 = arith.constant 1 : i32
    %33 = arith.addi %32, %c1_i32_13 : i32
    %34 = arith.index_cast %33 : i32 to index
    %35 = memref.load %arg2[%34] : memref<72xi32, #tpu.memory_space<smem>>
    %36 = arith.index_cast %35 : i32 to index
    %c0_14 = arith.constant 0 : index
    %37 = vector.load %arg4[%36, %c0_14] : memref<4x128xf32, #tpu.memory_space<vmem>>, vector<1x128xf32>
    %c3_i32_15 = arith.constant 3 : i32
    %38 = arith.muli %4, %c3_i32_15 : i32
    %c2_i32_16 = arith.constant 2 : i32
    %39 = arith.addi %38, %c2_i32_16 : i32
    %40 = arith.index_cast %39 : i32 to index
    %41 = memref.load %arg2[%40] : memref<72xi32, #tpu.memory_space<smem>>
    %42 = arith.index_cast %41 : i32 to index
    %c0_17 = arith.constant 0 : index
    %43 = vector.load %arg3[%42, %c0_17] : memref<16x128xf32, #tpu.memory_space<vmem>>, vector<1x128xf32>
    %44 = arith.mulf %31, %37 : vector<1x128xf32>
    %45 = arith.mulf %44, %43 : vector<1x128xf32>
    %c0_18 = arith.constant 0 : index
    %c0_19 = arith.constant 0 : index
    %46 = vector.load %arg7[%c0_18, %c0_19] : memref<8x128xf32, #tpu.memory_space<vmem>>, vector<1x128xf32>
    tpu.vector_store %arg7[%c0_18, %c0_19], %45 {strides = array<i32>} : memref<8x128xf32, #tpu.memory_space<vmem>>, vector<1x128xf32>,
    %c1_i32_20 = arith.constant 1 : i32
    %47 = arith.addi %0, %c1_i32_20 : i32
    %c3_i32_21 = arith.constant 3 : i32
    %48 = arith.muli %47, %c3_i32_21 : i32
    %c0_i32_22 = arith.constant 0 : i32
    %49 = arith.addi %48, %c0_i32_22 : i32
    %50 = arith.index_cast %49 : i32 to index
    %51 = memref.load %arg1[%50] : memref<72xi32, #tpu.memory_space<smem>>
    %52 = arith.index_cast %51 : i32 to index
    %c0_23 = arith.constant 0 : index
    %53 = vector.load %arg3[%52, %c0_23] : memref<16x128xf32, #tpu.memory_space<vmem>>, vector<1x128xf32>
    %c3_i32_24 = arith.constant 3 : i32
    %54 = arith.muli %47, %c3_i32_24 : i32
    %c1_i32_25 = arith.constant 1 : i32
    %55 = arith.addi %54, %c1_i32_25 : i32
    %56 = arith.index_cast %55 : i32 to index
    %57 = memref.load %arg1[%56] : memref<72xi32, #tpu.memory_space<smem>>
    %58 = arith.index_cast %57 : i32 to index
    %c0_26 = arith.constant 0 : index
    %59 = vector.load %arg4[%58, %c0_26] : memref<4x128xf32, #tpu.memory_space<vmem>>, vector<1x128xf32>
    %c3_i32_27 = arith.constant 3 : i32
    %60 = arith.muli %47, %c3_i32_27 : i32
    %c2_i32_28 = arith.constant 2 : i32
    %61 = arith.addi %60, %c2_i32_28 : i32
    %62 = arith.index_cast %61 : i32 to index
    %63 = memref.load %arg1[%62] : memref<72xi32, #tpu.memory_space<smem>>
    %64 = arith.index_cast %63 : i32 to index
    %c0_29 = arith.constant 0 : index
    %65 = vector.load %arg3[%64, %c0_29] : memref<16x128xf32, #tpu.memory_space<vmem>>, vector<1x128xf32>
    %66 = arith.mulf %53, %59 : vector<1x128xf32>
    %67 = arith.mulf %66, %65 : vector<1x128xf32>
    %c1 = arith.constant 1 : index
    %c0_30 = arith.constant 0 : index
    %68 = vector.load %arg6[%c1, %c0_30] : memref<8x128xf32, #tpu.memory_space<vmem>>, vector<1x128xf32>
    tpu.vector_store %arg6[%c1, %c0_30], %67 {strides = array<i32>} : memref<8x128xf32, #tpu.memory_space<vmem>>, vector<1x128xf32>,
    %c3_i32_31 = arith.constant 3 : i32
    %69 = arith.muli %47, %c3_i32_31 : i32
    %c0_i32_32 = arith.constant 0 : i32
    %70 = arith.addi %69, %c0_i32_32 : i32
    %71 = arith.index_cast %70 : i32 to index
    %72 = memref.load %arg2[%71] : memref<72xi32, #tpu.memory_space<smem>>
    %73 = arith.index_cast %72 : i32 to index
    %c0_33 = arith.constant 0 : index
    %74 = vector.load %arg3[%73, %c0_33] : memref<16x128xf32, #tpu.memory_space<vmem>>, vector<1x128xf32>
    %c3_i32_34 = arith.constant 3 : i32
    %75 = arith.muli %47, %c3_i32_34 : i32
    %c1_i32_35 = arith.constant 1 : i32
    %76 = arith.addi %75, %c1_i32_35 : i32
    %77 = arith.index_cast %76 : i32 to index
    %78 = memref.load %arg2[%77] : memref<72xi32, #tpu.memory_space<smem>>
    %79 = arith.index_cast %78 : i32 to index
    %c0_36 = arith.constant 0 : index
    %80 = vector.load %arg4[%79, %c0_36] : memref<4x128xf32, #tpu.memory_space<vmem>>, vector<1x128xf32>
    %c3_i32_37 = arith.constant 3 : i32
    %81 = arith.muli %47, %c3_i32_37 : i32
    %c2_i32_38 = arith.constant 2 : i32
    %82 = arith.addi %81, %c2_i32_38 : i32
    %83 = arith.index_cast %82 : i32 to index
    %84 = memref.load %arg2[%83] : memref<72xi32, #tpu.memory_space<smem>>
    %85 = arith.index_cast %84 : i32 to index
    %c0_39 = arith.constant 0 : index
    %86 = vector.load %arg3[%85, %c0_39] : memref<16x128xf32, #tpu.memory_space<vmem>>, vector<1x128xf32>
    %87 = arith.mulf %74, %80 : vector<1x128xf32>
    %88 = arith.mulf %87, %86 : vector<1x128xf32>
    %c1_40 = arith.constant 1 : index
    %c0_41 = arith.constant 0 : index
    %89 = vector.load %arg7[%c1_40, %c0_41] : memref<8x128xf32, #tpu.memory_space<vmem>>, vector<1x128xf32>
    tpu.vector_store %arg7[%c1_40, %c0_41], %88 {strides = array<i32>} : memref<8x128xf32, #tpu.memory_space<vmem>>, vector<1x128xf32>,
    %c2_i32_42 = arith.constant 2 : i32
    %90 = arith.addi %0, %c2_i32_42 : i32
    %c3_i32_43 = arith.constant 3 : i32
    %91 = arith.muli %90, %c3_i32_43 : i32
    %c0_i32_44 = arith.constant 0 : i32
    %92 = arith.addi %91, %c0_i32_44 : i32
    %93 = arith.index_cast %92 : i32 to index
    %94 = memref.load %arg1[%93] : memref<72xi32, #tpu.memory_space<smem>>
    %95 = arith.index_cast %94 : i32 to index
    %c0_45 = arith.constant 0 : index
    %96 = vector.load %arg3[%95, %c0_45] : memref<16x128xf32, #tpu.memory_space<vmem>>, vector<1x128xf32>
    %c3_i32_46 = arith.constant 3 : i32
    %97 = arith.muli %90, %c3_i32_46 : i32
    %c1_i32_47 = arith.constant 1 : i32
    %98 = arith.addi %97, %c1_i32_47 : i32
    %99 = arith.index_cast %98 : i32 to index
    %100 = memref.load %arg1[%99] : memref<72xi32, #tpu.memory_space<smem>>
    %101 = arith.index_cast %100 : i32 to index
    %c0_48 = arith.constant 0 : index
    %102 = vector.load %arg4[%101, %c0_48] : memref<4x128xf32, #tpu.memory_space<vmem>>, vector<1x128xf32>
    %c3_i32_49 = arith.constant 3 : i32
    %103 = arith.muli %90, %c3_i32_49 : i32
    %c2_i32_50 = arith.constant 2 : i32
    %104 = arith.addi %103, %c2_i32_50 : i32
    %105 = arith.index_cast %104 : i32 to index
    %106 = memref.load %arg1[%105] : memref<72xi32, #tpu.memory_space<smem>>
    %107 = arith.index_cast %106 : i32 to index
    %c0_51 = arith.constant 0 : index
    %108 = vector.load %arg3[%107, %c0_51] : memref<16x128xf32, #tpu.memory_space<vmem>>, vector<1x128xf32>
    %109 = arith.mulf %96, %102 : vector<1x128xf32>
    %110 = arith.mulf %109, %108 : vector<1x128xf32>
    %c2 = arith.constant 2 : index
    %c0_52 = arith.constant 0 : index
    %111 = vector.load %arg6[%c2, %c0_52] : memref<8x128xf32, #tpu.memory_space<vmem>>, vector<1x128xf32>
    tpu.vector_store %arg6[%c2, %c0_52], %110 {strides = array<i32>} : memref<8x128xf32, #tpu.memory_space<vmem>>, vector<1x128xf32>,
    %c3_i32_53 = arith.constant 3 : i32
    %112 = arith.muli %90, %c3_i32_53 : i32
    %c0_i32_54 = arith.constant 0 : i32
    %113 = arith.addi %112, %c0_i32_54 : i32
    %114 = arith.index_cast %113 : i32 to index
    %115 = memref.load %arg2[%114] : memref<72xi32, #tpu.memory_space<smem>>
    %116 = arith.index_cast %115 : i32 to index
    %c0_55 = arith.constant 0 : index
    %117 = vector.load %arg3[%116, %c0_55] : memref<16x128xf32, #tpu.memory_space<vmem>>, vector<1x128xf32>
    %c3_i32_56 = arith.constant 3 : i32
    %118 = arith.muli %90, %c3_i32_56 : i32
    %c1_i32_57 = arith.constant 1 : i32
    %119 = arith.addi %118, %c1_i32_57 : i32
    %120 = arith.index_cast %119 : i32 to index
    %121 = memref.load %arg2[%120] : memref<72xi32, #tpu.memory_space<smem>>
    %122 = arith.index_cast %121 : i32 to index
    %c0_58 = arith.constant 0 : index
    %123 = vector.load %arg4[%122, %c0_58] : memref<4x128xf32, #tpu.memory_space<vmem>>, vector<1x128xf32>
    %c3_i32_59 = arith.constant 3 : i32
    %124 = arith.muli %90, %c3_i32_59 : i32
    %c2_i32_60 = arith.constant 2 : i32
    %125 = arith.addi %124, %c2_i32_60 : i32
    %126 = arith.index_cast %125 : i32 to index
    %127 = memref.load %arg2[%126] : memref<72xi32, #tpu.memory_space<smem>>
    %128 = arith.index_cast %127 : i32 to index
    %c0_61 = arith.constant 0 : index
    %129 = vector.load %arg3[%128, %c0_61] : memref<16x128xf32, #tpu.memory_space<vmem>>, vector<1x128xf32>
    %130 = arith.mulf %117, %123 : vector<1x128xf32>
    %131 = arith.mulf %130, %129 : vector<1x128xf32>
    %c2_62 = arith.constant 2 : index
    %c0_63 = arith.constant 0 : index
    %132 = vector.load %arg7[%c2_62, %c0_63] : memref<8x128xf32, #tpu.memory_space<vmem>>, vector<1x128xf32>
    tpu.vector_store %arg7[%c2_62, %c0_63], %131 {strides = array<i32>} : memref<8x128xf32, #tpu.memory_space<vmem>>, vector<1x128xf32>,
    %c3_i32_64 = arith.constant 3 : i32
    %133 = arith.addi %0, %c3_i32_64 : i32
    %c3_i32_65 = arith.constant 3 : i32
    %134 = arith.muli %133, %c3_i32_65 : i32
    %c0_i32_66 = arith.constant 0 : i32
    %135 = arith.addi %134, %c0_i32_66 : i32
    %136 = arith.index_cast %135 : i32 to index
    %137 = memref.load %arg1[%136] : memref<72xi32, #tpu.memory_space<smem>>
    %138 = arith.index_cast %137 : i32 to index
    %c0_67 = arith.constant 0 : index
    %139 = vector.load %arg3[%138, %c0_67] : memref<16x128xf32, #tpu.memory_space<vmem>>, vector<1x128xf32>
    %c3_i32_68 = arith.constant 3 : i32
    %140 = arith.muli %133, %c3_i32_68 : i32
    %c1_i32_69 = arith.constant 1 : i32
    %141 = arith.addi %140, %c1_i32_69 : i32
    %142 = arith.index_cast %141 : i32 to index
    %143 = memref.load %arg1[%142] : memref<72xi32, #tpu.memory_space<smem>>
    %144 = arith.index_cast %143 : i32 to index
    %c0_70 = arith.constant 0 : index
    %145 = vector.load %arg4[%144, %c0_70] : memref<4x128xf32, #tpu.memory_space<vmem>>, vector<1x128xf32>
    %c3_i32_71 = arith.constant 3 : i32
    %146 = arith.muli %133, %c3_i32_71 : i32
    %c2_i32_72 = arith.constant 2 : i32
    %147 = arith.addi %146, %c2_i32_72 : i32
    %148 = arith.index_cast %147 : i32 to index
    %149 = memref.load %arg1[%148] : memref<72xi32, #tpu.memory_space<smem>>
    %150 = arith.index_cast %149 : i32 to index
    %c0_73 = arith.constant 0 : index
    %151 = vector.load %arg3[%150, %c0_73] : memref<16x128xf32, #tpu.memory_space<vmem>>, vector<1x128xf32>
    %152 = arith.mulf %139, %145 : vector<1x128xf32>
    %153 = arith.mulf %152, %151 : vector<1x128xf32>
    %c3 = arith.constant 3 : index
    %c0_74 = arith.constant 0 : index
    %154 = vector.load %arg6[%c3, %c0_74] : memref<8x128xf32, #tpu.memory_space<vmem>>, vector<1x128xf32>
    tpu.vector_store %arg6[%c3, %c0_74], %153 {strides = array<i32>} : memref<8x128xf32, #tpu.memory_space<vmem>>, vector<1x128xf32>,
    %c3_i32_75 = arith.constant 3 : i32
    %155 = arith.muli %133, %c3_i32_75 : i32
    %c0_i32_76 = arith.constant 0 : i32
    %156 = arith.addi %155, %c0_i32_76 : i32
    %157 = arith.index_cast %156 : i32 to index
    %158 = memref.load %arg2[%157] : memref<72xi32, #tpu.memory_space<smem>>
    %159 = arith.index_cast %158 : i32 to index
    %c0_77 = arith.constant 0 : index
    %160 = vector.load %arg3[%159, %c0_77] : memref<16x128xf32, #tpu.memory_space<vmem>>, vector<1x128xf32>
    %c3_i32_78 = arith.constant 3 : i32
    %161 = arith.muli %133, %c3_i32_78 : i32
    %c1_i32_79 = arith.constant 1 : i32
    %162 = arith.addi %161, %c1_i32_79 : i32
    %163 = arith.index_cast %162 : i32 to index
    %164 = memref.load %arg2[%163] : memref<72xi32, #tpu.memory_space<smem>>
    %165 = arith.index_cast %164 : i32 to index
    %c0_80 = arith.constant 0 : index
    %166 = vector.load %arg4[%165, %c0_80] : memref<4x128xf32, #tpu.memory_space<vmem>>, vector<1x128xf32>
    %c3_i32_81 = arith.constant 3 : i32
    %167 = arith.muli %133, %c3_i32_81 : i32
    %c2_i32_82 = arith.constant 2 : i32
    %168 = arith.addi %167, %c2_i32_82 : i32
    %169 = arith.index_cast %168 : i32 to index
    %170 = memref.load %arg2[%169] : memref<72xi32, #tpu.memory_space<smem>>
    %171 = arith.index_cast %170 : i32 to index
    %c0_83 = arith.constant 0 : index
    %172 = vector.load %arg3[%171, %c0_83] : memref<16x128xf32, #tpu.memory_space<vmem>>, vector<1x128xf32>
    %173 = arith.mulf %160, %166 : vector<1x128xf32>
    %174 = arith.mulf %173, %172 : vector<1x128xf32>
    %c3_84 = arith.constant 3 : index
    %c0_85 = arith.constant 0 : index
    %175 = vector.load %arg7[%c3_84, %c0_85] : memref<8x128xf32, #tpu.memory_space<vmem>>, vector<1x128xf32>
    tpu.vector_store %arg7[%c3_84, %c0_85], %174 {strides = array<i32>} : memref<8x128xf32, #tpu.memory_space<vmem>>, vector<1x128xf32>,
    %c4_i32 = arith.constant 4 : i32
    %176 = arith.addi %0, %c4_i32 : i32
    %c3_i32_86 = arith.constant 3 : i32
    %177 = arith.muli %176, %c3_i32_86 : i32
    %c0_i32_87 = arith.constant 0 : i32
    %178 = arith.addi %177, %c0_i32_87 : i32
    %179 = arith.index_cast %178 : i32 to index
    %180 = memref.load %arg1[%179] : memref<72xi32, #tpu.memory_space<smem>>
    %181 = arith.index_cast %180 : i32 to index
    %c0_88 = arith.constant 0 : index
    %182 = vector.load %arg3[%181, %c0_88] : memref<16x128xf32, #tpu.memory_space<vmem>>, vector<1x128xf32>
    %c3_i32_89 = arith.constant 3 : i32
    %183 = arith.muli %176, %c3_i32_89 : i32
    %c1_i32_90 = arith.constant 1 : i32
    %184 = arith.addi %183, %c1_i32_90 : i32
    %185 = arith.index_cast %184 : i32 to index
    %186 = memref.load %arg1[%185] : memref<72xi32, #tpu.memory_space<smem>>
    %187 = arith.index_cast %186 : i32 to index
    %c0_91 = arith.constant 0 : index
    %188 = vector.load %arg4[%187, %c0_91] : memref<4x128xf32, #tpu.memory_space<vmem>>, vector<1x128xf32>
    %c3_i32_92 = arith.constant 3 : i32
    %189 = arith.muli %176, %c3_i32_92 : i32
    %c2_i32_93 = arith.constant 2 : i32
    %190 = arith.addi %189, %c2_i32_93 : i32
    %191 = arith.index_cast %190 : i32 to index
    %192 = memref.load %arg1[%191] : memref<72xi32, #tpu.memory_space<smem>>
    %193 = arith.index_cast %192 : i32 to index
    %c0_94 = arith.constant 0 : index
    %194 = vector.load %arg3[%193, %c0_94] : memref<16x128xf32, #tpu.memory_space<vmem>>, vector<1x128xf32>
    %195 = arith.mulf %182, %188 : vector<1x128xf32>
    %196 = arith.mulf %195, %194 : vector<1x128xf32>
    %c4 = arith.constant 4 : index
    %c0_95 = arith.constant 0 : index
    %197 = vector.load %arg6[%c4, %c0_95] : memref<8x128xf32, #tpu.memory_space<vmem>>, vector<1x128xf32>
    tpu.vector_store %arg6[%c4, %c0_95], %196 {strides = array<i32>} : memref<8x128xf32, #tpu.memory_space<vmem>>, vector<1x128xf32>,
    %c3_i32_96 = arith.constant 3 : i32
    %198 = arith.muli %176, %c3_i32_96 : i32
    %c0_i32_97 = arith.constant 0 : i32
    %199 = arith.addi %198, %c0_i32_97 : i32
    %200 = arith.index_cast %199 : i32 to index
    %201 = memref.load %arg2[%200] : memref<72xi32, #tpu.memory_space<smem>>
    %202 = arith.index_cast %201 : i32 to index
    %c0_98 = arith.constant 0 : index
    %203 = vector.load %arg3[%202, %c0_98] : memref<16x128xf32, #tpu.memory_space<vmem>>, vector<1x128xf32>
    %c3_i32_99 = arith.constant 3 : i32
    %204 = arith.muli %176, %c3_i32_99 : i32
    %c1_i32_100 = arith.constant 1 : i32
    %205 = arith.addi %204, %c1_i32_100 : i32
    %206 = arith.index_cast %205 : i32 to index
    %207 = memref.load %arg2[%206] : memref<72xi32, #tpu.memory_space<smem>>
    %208 = arith.index_cast %207 : i32 to index
    %c0_101 = arith.constant 0 : index
    %209 = vector.load %arg4[%208, %c0_101] : memref<4x128xf32, #tpu.memory_space<vmem>>, vector<1x128xf32>
    %c3_i32_102 = arith.constant 3 : i32
    %210 = arith.muli %176, %c3_i32_102 : i32
    %c2_i32_103 = arith.constant 2 : i32
    %211 = arith.addi %210, %c2_i32_103 : i32
    %212 = arith.index_cast %211 : i32 to index
    %213 = memref.load %arg2[%212] : memref<72xi32, #tpu.memory_space<smem>>
    %214 = arith.index_cast %213 : i32 to index
    %c0_104 = arith.constant 0 : index
    %215 = vector.load %arg3[%214, %c0_104] : memref<16x128xf32, #tpu.memory_space<vmem>>, vector<1x128xf32>
    %216 = arith.mulf %203, %209 : vector<1x128xf32>
    %217 = arith.mulf %216, %215 : vector<1x128xf32>
    %c4_105 = arith.constant 4 : index
    %c0_106 = arith.constant 0 : index
    %218 = vector.load %arg7[%c4_105, %c0_106] : memref<8x128xf32, #tpu.memory_space<vmem>>, vector<1x128xf32>
    tpu.vector_store %arg7[%c4_105, %c0_106], %217 {strides = array<i32>} : memref<8x128xf32, #tpu.memory_space<vmem>>, vector<1x128xf32>,
    %c5_i32 = arith.constant 5 : i32
    %219 = arith.addi %0, %c5_i32 : i32
    %c3_i32_107 = arith.constant 3 : i32
    %220 = arith.muli %219, %c3_i32_107 : i32
    %c0_i32_108 = arith.constant 0 : i32
    %221 = arith.addi %220, %c0_i32_108 : i32
    %222 = arith.index_cast %221 : i32 to index
    %223 = memref.load %arg1[%222] : memref<72xi32, #tpu.memory_space<smem>>
    %224 = arith.index_cast %223 : i32 to index
    %c0_109 = arith.constant 0 : index
    %225 = vector.load %arg3[%224, %c0_109] : memref<16x128xf32, #tpu.memory_space<vmem>>, vector<1x128xf32>
    %c3_i32_110 = arith.constant 3 : i32
    %226 = arith.muli %219, %c3_i32_110 : i32
    %c1_i32_111 = arith.constant 1 : i32
    %227 = arith.addi %226, %c1_i32_111 : i32
    %228 = arith.index_cast %227 : i32 to index
    %229 = memref.load %arg1[%228] : memref<72xi32, #tpu.memory_space<smem>>
    %230 = arith.index_cast %229 : i32 to index
    %c0_112 = arith.constant 0 : index
    %231 = vector.load %arg4[%230, %c0_112] : memref<4x128xf32, #tpu.memory_space<vmem>>, vector<1x128xf32>
    %c3_i32_113 = arith.constant 3 : i32
    %232 = arith.muli %219, %c3_i32_113 : i32
    %c2_i32_114 = arith.constant 2 : i32
    %233 = arith.addi %232, %c2_i32_114 : i32
    %234 = arith.index_cast %233 : i32 to index
    %235 = memref.load %arg1[%234] : memref<72xi32, #tpu.memory_space<smem>>
    %236 = arith.index_cast %235 : i32 to index
    %c0_115 = arith.constant 0 : index
    %237 = vector.load %arg3[%236, %c0_115] : memref<16x128xf32, #tpu.memory_space<vmem>>, vector<1x128xf32>
    %238 = arith.mulf %225, %231 : vector<1x128xf32>
    %239 = arith.mulf %238, %237 : vector<1x128xf32>
    %c5 = arith.constant 5 : index
    %c0_116 = arith.constant 0 : index
    %240 = vector.load %arg6[%c5, %c0_116] : memref<8x128xf32, #tpu.memory_space<vmem>>, vector<1x128xf32>
    tpu.vector_store %arg6[%c5, %c0_116], %239 {strides = array<i32>} : memref<8x128xf32, #tpu.memory_space<vmem>>, vector<1x128xf32>,
    %c3_i32_117 = arith.constant 3 : i32
    %241 = arith.muli %219, %c3_i32_117 : i32
    %c0_i32_118 = arith.constant 0 : i32
    %242 = arith.addi %241, %c0_i32_118 : i32
    %243 = arith.index_cast %242 : i32 to index
    %244 = memref.load %arg2[%243] : memref<72xi32, #tpu.memory_space<smem>>
    %245 = arith.index_cast %244 : i32 to index
    %c0_119 = arith.constant 0 : index
    %246 = vector.load %arg3[%245, %c0_119] : memref<16x128xf32, #tpu.memory_space<vmem>>, vector<1x128xf32>
    %c3_i32_120 = arith.constant 3 : i32
    %247 = arith.muli %219, %c3_i32_120 : i32
    %c1_i32_121 = arith.constant 1 : i32
    %248 = arith.addi %247, %c1_i32_121 : i32
    %249 = arith.index_cast %248 : i32 to index
    %250 = memref.load %arg2[%249] : memref<72xi32, #tpu.memory_space<smem>>
    %251 = arith.index_cast %250 : i32 to index
    %c0_122 = arith.constant 0 : index
    %252 = vector.load %arg4[%251, %c0_122] : memref<4x128xf32, #tpu.memory_space<vmem>>, vector<1x128xf32>
    %c3_i32_123 = arith.constant 3 : i32
    %253 = arith.muli %219, %c3_i32_123 : i32
    %c2_i32_124 = arith.constant 2 : i32
    %254 = arith.addi %253, %c2_i32_124 : i32
    %255 = arith.index_cast %254 : i32 to index
    %256 = memref.load %arg2[%255] : memref<72xi32, #tpu.memory_space<smem>>
    %257 = arith.index_cast %256 : i32 to index
    %c0_125 = arith.constant 0 : index
    %258 = vector.load %arg3[%257, %c0_125] : memref<16x128xf32, #tpu.memory_space<vmem>>, vector<1x128xf32>
    %259 = arith.mulf %246, %252 : vector<1x128xf32>
    %260 = arith.mulf %259, %258 : vector<1x128xf32>
    %c5_126 = arith.constant 5 : index
    %c0_127 = arith.constant 0 : index
    %261 = vector.load %arg7[%c5_126, %c0_127] : memref<8x128xf32, #tpu.memory_space<vmem>>, vector<1x128xf32>
    tpu.vector_store %arg7[%c5_126, %c0_127], %260 {strides = array<i32>} : memref<8x128xf32, #tpu.memory_space<vmem>>, vector<1x128xf32>,
    %c6_i32 = arith.constant 6 : i32
    %262 = arith.addi %0, %c6_i32 : i32
    %c3_i32_128 = arith.constant 3 : i32
    %263 = arith.muli %262, %c3_i32_128 : i32
    %c0_i32_129 = arith.constant 0 : i32
    %264 = arith.addi %263, %c0_i32_129 : i32
    %265 = arith.index_cast %264 : i32 to index
    %266 = memref.load %arg1[%265] : memref<72xi32, #tpu.memory_space<smem>>
    %267 = arith.index_cast %266 : i32 to index
    %c0_130 = arith.constant 0 : index
    %268 = vector.load %arg3[%267, %c0_130] : memref<16x128xf32, #tpu.memory_space<vmem>>, vector<1x128xf32>
    %c3_i32_131 = arith.constant 3 : i32
    %269 = arith.muli %262, %c3_i32_131 : i32
    %c1_i32_132 = arith.constant 1 : i32
    %270 = arith.addi %269, %c1_i32_132 : i32
    %271 = arith.index_cast %270 : i32 to index
    %272 = memref.load %arg1[%271] : memref<72xi32, #tpu.memory_space<smem>>
    %273 = arith.index_cast %272 : i32 to index
    %c0_133 = arith.constant 0 : index
    %274 = vector.load %arg4[%273, %c0_133] : memref<4x128xf32, #tpu.memory_space<vmem>>, vector<1x128xf32>
    %c3_i32_134 = arith.constant 3 : i32
    %275 = arith.muli %262, %c3_i32_134 : i32
    %c2_i32_135 = arith.constant 2 : i32
    %276 = arith.addi %275, %c2_i32_135 : i32
    %277 = arith.index_cast %276 : i32 to index
    %278 = memref.load %arg1[%277] : memref<72xi32, #tpu.memory_space<smem>>
    %279 = arith.index_cast %278 : i32 to index
    %c0_136 = arith.constant 0 : index
    %280 = vector.load %arg3[%279, %c0_136] : memref<16x128xf32, #tpu.memory_space<vmem>>, vector<1x128xf32>
    %281 = arith.mulf %268, %274 : vector<1x128xf32>
    %282 = arith.mulf %281, %280 : vector<1x128xf32>
    %c6 = arith.constant 6 : index
    %c0_137 = arith.constant 0 : index
    %283 = vector.load %arg6[%c6, %c0_137] : memref<8x128xf32, #tpu.memory_space<vmem>>, vector<1x128xf32>
    tpu.vector_store %arg6[%c6, %c0_137], %282 {strides = array<i32>} : memref<8x128xf32, #tpu.memory_space<vmem>>, vector<1x128xf32>,
    %c3_i32_138 = arith.constant 3 : i32
    %284 = arith.muli %262, %c3_i32_138 : i32
    %c0_i32_139 = arith.constant 0 : i32
    %285 = arith.addi %284, %c0_i32_139 : i32
    %286 = arith.index_cast %285 : i32 to index
    %287 = memref.load %arg2[%286] : memref<72xi32, #tpu.memory_space<smem>>
    %288 = arith.index_cast %287 : i32 to index
    %c0_140 = arith.constant 0 : index
    %289 = vector.load %arg3[%288, %c0_140] : memref<16x128xf32, #tpu.memory_space<vmem>>, vector<1x128xf32>
    %c3_i32_141 = arith.constant 3 : i32
    %290 = arith.muli %262, %c3_i32_141 : i32
    %c1_i32_142 = arith.constant 1 : i32
    %291 = arith.addi %290, %c1_i32_142 : i32
    %292 = arith.index_cast %291 : i32 to index
    %293 = memref.load %arg2[%292] : memref<72xi32, #tpu.memory_space<smem>>
    %294 = arith.index_cast %293 : i32 to index
    %c0_143 = arith.constant 0 : index
    %295 = vector.load %arg4[%294, %c0_143] : memref<4x128xf32, #tpu.memory_space<vmem>>, vector<1x128xf32>
    %c3_i32_144 = arith.constant 3 : i32
    %296 = arith.muli %262, %c3_i32_144 : i32
    %c2_i32_145 = arith.constant 2 : i32
    %297 = arith.addi %296, %c2_i32_145 : i32
    %298 = arith.index_cast %297 : i32 to index
    %299 = memref.load %arg2[%298] : memref<72xi32, #tpu.memory_space<smem>>
    %300 = arith.index_cast %299 : i32 to index
    %c0_146 = arith.constant 0 : index
    %301 = vector.load %arg3[%300, %c0_146] : memref<16x128xf32, #tpu.memory_space<vmem>>, vector<1x128xf32>
    %302 = arith.mulf %289, %295 : vector<1x128xf32>
    %303 = arith.mulf %302, %301 : vector<1x128xf32>
    %c6_147 = arith.constant 6 : index
    %c0_148 = arith.constant 0 : index
    %304 = vector.load %arg7[%c6_147, %c0_148] : memref<8x128xf32, #tpu.memory_space<vmem>>, vector<1x128xf32>
    tpu.vector_store %arg7[%c6_147, %c0_148], %303 {strides = array<i32>} : memref<8x128xf32, #tpu.memory_space<vmem>>, vector<1x128xf32>,
    %c7_i32 = arith.constant 7 : i32
    %305 = arith.addi %0, %c7_i32 : i32
    %c3_i32_149 = arith.constant 3 : i32
    %306 = arith.muli %305, %c3_i32_149 : i32
    %c0_i32_150 = arith.constant 0 : i32
    %307 = arith.addi %306, %c0_i32_150 : i32
    %308 = arith.index_cast %307 : i32 to index
    %309 = memref.load %arg1[%308] : memref<72xi32, #tpu.memory_space<smem>>
    %310 = arith.index_cast %309 : i32 to index
    %c0_151 = arith.constant 0 : index
    %311 = vector.load %arg3[%310, %c0_151] : memref<16x128xf32, #tpu.memory_space<vmem>>, vector<1x128xf32>
    %c3_i32_152 = arith.constant 3 : i32
    %312 = arith.muli %305, %c3_i32_152 : i32
    %c1_i32_153 = arith.constant 1 : i32
    %313 = arith.addi %312, %c1_i32_153 : i32
    %314 = arith.index_cast %313 : i32 to index
    %315 = memref.load %arg1[%314] : memref<72xi32, #tpu.memory_space<smem>>
    %316 = arith.index_cast %315 : i32 to index
    %c0_154 = arith.constant 0 : index
    %317 = vector.load %arg4[%316, %c0_154] : memref<4x128xf32, #tpu.memory_space<vmem>>, vector<1x128xf32>
    %c3_i32_155 = arith.constant 3 : i32
    %318 = arith.muli %305, %c3_i32_155 : i32
    %c2_i32_156 = arith.constant 2 : i32
    %319 = arith.addi %318, %c2_i32_156 : i32
    %320 = arith.index_cast %319 : i32 to index
    %321 = memref.load %arg1[%320] : memref<72xi32, #tpu.memory_space<smem>>
    %322 = arith.index_cast %321 : i32 to index
    %c0_157 = arith.constant 0 : index
    %323 = vector.load %arg3[%322, %c0_157] : memref<16x128xf32, #tpu.memory_space<vmem>>, vector<1x128xf32>
    %324 = arith.mulf %311, %317 : vector<1x128xf32>
    %325 = arith.mulf %324, %323 : vector<1x128xf32>
    %c7 = arith.constant 7 : index
    %c0_158 = arith.constant 0 : index
    %326 = vector.load %arg6[%c7, %c0_158] : memref<8x128xf32, #tpu.memory_space<vmem>>, vector<1x128xf32>
    tpu.vector_store %arg6[%c7, %c0_158], %325 {strides = array<i32>} : memref<8x128xf32, #tpu.memory_space<vmem>>, vector<1x128xf32>,
    %c3_i32_159 = arith.constant 3 : i32
    %327 = arith.muli %305, %c3_i32_159 : i32
    %c0_i32_160 = arith.constant 0 : i32
    %328 = arith.addi %327, %c0_i32_160 : i32
    %329 = arith.index_cast %328 : i32 to index
    %330 = memref.load %arg2[%329] : memref<72xi32, #tpu.memory_space<smem>>
    %331 = arith.index_cast %330 : i32 to index
    %c0_161 = arith.constant 0 : index
    %332 = vector.load %arg3[%331, %c0_161] : memref<16x128xf32, #tpu.memory_space<vmem>>, vector<1x128xf32>
    %c3_i32_162 = arith.constant 3 : i32
    %333 = arith.muli %305, %c3_i32_162 : i32
    %c1_i32_163 = arith.constant 1 : i32
    %334 = arith.addi %333, %c1_i32_163 : i32
    %335 = arith.index_cast %334 : i32 to index
    %336 = memref.load %arg2[%335] : memref<72xi32, #tpu.memory_space<smem>>
    %337 = arith.index_cast %336 : i32 to index
    %c0_164 = arith.constant 0 : index
    %338 = vector.load %arg4[%337, %c0_164] : memref<4x128xf32, #tpu.memory_space<vmem>>, vector<1x128xf32>
    %c3_i32_165 = arith.constant 3 : i32
    %339 = arith.muli %305, %c3_i32_165 : i32
    %c2_i32_166 = arith.constant 2 : i32
    %340 = arith.addi %339, %c2_i32_166 : i32
    %341 = arith.index_cast %340 : i32 to index
    %342 = memref.load %arg2[%341] : memref<72xi32, #tpu.memory_space<smem>>
    %343 = arith.index_cast %342 : i32 to index
    %c0_167 = arith.constant 0 : index
    %344 = vector.load %arg3[%343, %c0_167] : memref<16x128xf32, #tpu.memory_space<vmem>>, vector<1x128xf32>
    %345 = arith.mulf %332, %338 : vector<1x128xf32>
    %346 = arith.mulf %345, %344 : vector<1x128xf32>
    %c7_168 = arith.constant 7 : index
    %c0_169 = arith.constant 0 : index
    %347 = vector.load %arg7[%c7_168, %c0_169] : memref<8x128xf32, #tpu.memory_space<vmem>>, vector<1x128xf32>
    tpu.vector_store %arg7[%c7_168, %c0_169], %346 {strides = array<i32>} : memref<8x128xf32, #tpu.memory_space<vmem>>, vector<1x128xf32>,
    %c0_170 = arith.constant 0 : index
    %c0_171 = arith.constant 0 : index
    %348 = vector.load %arg6[%c0_170, %c0_171] : memref<8x128xf32, #tpu.memory_space<vmem>>, vector<8x128xf32>
    %cst = arith.constant dense<0.000000e+00> : vector<8xf32>
    %349 = vector.multi_reduction <add>, %348, %cst [1] : vector<8x128xf32> to vector<8xf32>
    %350 = vector.shape_cast %349 : vector<8xf32> to vector<8x1xf32>
    %c0_172 = arith.constant 0 : index
    %c0_173 = arith.constant 0 : index
    %351 = vector.load %arg7[%c0_172, %c0_173] : memref<8x128xf32, #tpu.memory_space<vmem>>, vector<8x128xf32>
    %cst_174 = arith.constant dense<0.000000e+00> : vector<8xf32>
    %352 = vector.multi_reduction <add>, %351, %cst_174 [1] : vector<8x128xf32> to vector<8xf32>
    %353 = vector.shape_cast %352 : vector<8xf32> to vector<8x1xf32>
    %354 = tpu.iota {dimensions = array<i32: 0>} : vector<8x1xi32>
    %355 = vector.broadcast %0 : i32 to vector<8x1xi32>
    %356 = arith.addi %355, %354 : vector<8x1xi32>
    %c20_i32 = arith.constant 20 : i32
    %357 = vector.broadcast %c20_i32 : i32 to vector<8x1xi32>
    %358 = arith.cmpi slt, %356, %357 : vector<8x1xi32>
    %359 = arith.subf %350, %353 : vector<8x1xf32>
    %cst_175 = arith.constant 1.000000e+00 : f32
    %360 = vector.broadcast %cst_175 : f32 to vector<8x1xf32>
    %361 = arith.addf %359, %360 : vector<8x1xf32>
    %cst_176 = arith.constant 0.000000e+00 : f32
    %362 = vector.broadcast %cst_176 : f32 to vector<8x1xf32>
    %363 = arith.maximumf %361, %362 : vector<8x1xf32>
    %cst_177 = arith.constant 0.000000e+00 : f32
    %364 = vector.broadcast %cst_177 : f32 to vector<8x1xf32>
    %365 = arith.select %358, %363, %364 : vector<8x1xi1>, vector<8x1xf32>
    %c0_178 = arith.constant 0 : index
    %c0_179 = arith.constant 0 : index
    %366 = vector.load %arg5[%c0_178, %c0_179] : memref<1x1xf32, #tpu.memory_space<vmem>>, vector<1x1xf32>
    %cst_180 = arith.constant dense<0.000000e+00> : vector<1xf32>
    %367 = vector.multi_reduction <add>, %365, %cst_180 [0] : vector<8x1xf32> to vector<1xf32>
    %368 = vector.shape_cast %367 : vector<1xf32> to vector<1x1xf32>
    %369 = arith.addf %366, %368 : vector<1x1xf32>
    %c0_181 = arith.constant 0 : index
    %c0_182 = arith.constant 0 : index
    %370 = vector.load %arg5[%c0_181, %c0_182] : memref<1x1xf32, #tpu.memory_space<vmem>>, vector<1x1xf32>
    tpu.vector_store %arg5[%c0_181, %c0_182], %369 {strides = array<i32>} : memref<1x1xf32, #tpu.memory_space<vmem>>, vector<1x1xf32>,
    %c2_i32_183 = arith.constant 2 : i32
    %371 = arith.cmpi eq, %arg0, %c2_i32_183 : i32
    %372 = arith.extui %371 : i1 to i32
    %c0_i32_184 = arith.constant 0 : i32
    %373 = arith.cmpi ne, %372, %c0_i32_184 : i32
    scf.if %373 {
      %c0_185 = arith.constant 0 : index
      %c0_186 = arith.constant 0 : index
      %374 = vector.load %arg5[%c0_185, %c0_186] : memref<1x1xf32, #tpu.memory_space<vmem>>, vector<1x1xf32>
      %cst_187 = arith.constant 5.000000e-02 : f32
      %375 = vector.broadcast %cst_187 : f32 to vector<1x1xf32>
      %376 = arith.mulf %374, %375 : vector<1x1xf32>
      %c0_188 = arith.constant 0 : index
      %c0_189 = arith.constant 0 : index
      %377 = vector.load %arg5[%c0_188, %c0_189] : memref<1x1xf32, #tpu.memory_space<vmem>>, vector<1x1xf32>
      tpu.vector_store %arg5[%c0_188, %c0_189], %376 {strides = array<i32>} : memref<1x1xf32, #tpu.memory_space<vmem>>, vector<1x1xf32>,
    } else {
    }
    return
  }
  func.func @transform_0(%arg0: i32, %arg1: memref<72xi32, #tpu.memory_space<smem>>, %arg2: memref<72xi32, #tpu.memory_space<smem>>) -> (i32, i32) {
    %c0_i32 = arith.constant 0 : i32
    %c0_i32_0 = arith.constant 0 : i32
    %c0_i32_1 = arith.constant 0 : i32
    return %c0_i32, %c0_i32_0 : i32, i32
  }
  func.func @transform_1(%arg0: i32, %arg1: memref<72xi32, #tpu.memory_space<smem>>, %arg2: memref<72xi32, #tpu.memory_space<smem>>) -> (i32, i32) {
    %c0_i32 = arith.constant 0 : i32
    %c0_i32_0 = arith.constant 0 : i32
    %c0_i32_1 = arith.constant 0 : i32
    return %c0_i32, %c0_i32_0 : i32, i32
  }
  func.func @transform_2(%arg0: i32, %arg1: memref<72xi32, #tpu.memory_space<smem>>, %arg2: memref<72xi32, #tpu.memory_space<smem>>) -> (i32, i32) {
    %c0_i32 = arith.constant 0 : i32
    %c0_i32_0 = arith.constant 0 : i32
    %c0_i32_1 = arith.constant 0 : i32
    return %c0_i32, %c0_i32_0 : i32, i32
  }
}

</mosaic_0001>

<bundles_post_ra>
// kernel: tpu_custom_call.1
= control target key start
LH: loop header
LB: loop body
LE: loop exit
PB: predicated region body
PF: predicated region fallthrough
CT: control target
= control target key end

     0   :  { %s931_s0 = inlined_call_operand.hbm [shape: s32[72], index: 0, kind: input, shape index: {}]   ;;  %s932_s2 = inlined_call_operand.hbm [shape: f32[16,128], index: 2, kind: input, shape index: {}]   ;;  %s933_s3 = inlined_call_operand.vmem [shape: f32[4,128], index: 3, kind: input, shape index: {}]   ;;  %s934_s4 = inlined_call_operand.hbm [shape: f32[1,1], index: 4, kind: output, shape index: {}]   ;;  %s935_s1 = inlined_call_operand.vmem [shape: s32[72], index: 1, kind: input, shape index: {}]  }
   0x1   :  { %954 = sst [smem:[#allocation14_spill]] %s932_s2  ;;  %s534_s17 = scalar_lea.hbm %s931_s0, 16 }
   0x2   :  { %p535_p0 = scmp.ne.s32.totalorder %s931_s0, %s534_s17  ;;  %p538_p1 = scmp.lt.u32.totalorder %s534_s17, %s931_s0 }
   0x4   :  { %p540_p2 = pnand %p538_p1, %p535_p0 }
   0x6   :  { %543 = shalt.err (!%p540_p2)  }
   0x7   :  { %s628_s22 = smov [#allocation5]   ;;  %s11_s27 = sshll.u32 %s935_s1, 4  ;;  %s12_s27 = int_to_ptr.vmem [resolvable:$true] %s11_s27 }
   0x8   :  { %10 = dma.hbm_to_smem %s931_s0, 16, %s628_s22, [#allocation4] }
   0x9   :  { %s544_s28 = scalar_lea.vmem %s12_s27, 16  ;;  %p549_p4 = scmp.lt.s32.totalorder %s12_s27, %s12_s27 }
   0xa   :  { %p545_p3 = scmp.ne.s32.totalorder %s12_s27, %s544_s28  ;;  %p550_p5 = scmp.lt.s32.totalorder %s544_s28, %s544_s28 }
   0xc   :  { %p551_p6 = por %p550_p5, %p549_p4 }
   0xe   :  { %p552_p7 = pnand %p551_p6, %p545_p3 }
  0x10   :  { %555 = shalt.err (!%p552_p7)  }
  0x11   :  { %s629_s29 = smov [#allocation6]  }
  0x12   :  { %14 = dma.vmem_to_smem %s12_s27, 16, %s629_s29, [#allocation4] }
  0x13   :  { %614 = dma.done.wait [#allocation4], 32 }
  0x14   :  { %615 = vsyncadd [#allocation4], 4294967264 }
  0x15   :  { %16 = sfence }
  0x16   :  { %17 = vsyncpa [#allocation8], 0 }
  0x17   :  { %18 = vsyncpa [#allocation9], 0  ;;  %s675_s0 = smov 0  }
  0x18 LB: > { %s681_s1 = sadd.s32 4294967295, %s626_s0   ;;  %p492_p8 = scmp.ge.s32.totalorder %s626_s0, 1  ;;  %s626_s0 = sphi %s675_s0, %s24_s0  }
  0x19   : > { %p92_p9 = scmp.lt.s32.totalorder %s626_s0, 4  ;;  %s630_s30 = smov [#allocation7]  }
  0x1a   : > { %s104_s5 = sshll.u32 %s630_s30, 4  ;;  %p936_p12 = scmp.eq.s32.totalorder %s681_s1, 0  ;;  %s105_s5 = int_to_ptr.vmem [resolvable:$true] %s104_s5 }
  0x1b   : > { %p686_p11 = pnand %p492_p8, %p92_p9  ;;  %s957_s2 = sld [smem:[#allocation14_spill]] }
  0x1d   : > { %s955_s6 = scalar_select %p686_p11, 1, 0 }
  0x1e   : > { %p511_p13 = pneg %p686_p11 }
  0x20   : > { %p695_p0 = pnand %p936_p12, %p511_p13 }
  0x21   : > { %s556_s10 = scalar_lea.hbm %s957_s2, 256 }
  0x22   : > { %p557_p1 = scmp.ne.s32.totalorder %s957_s2, %s556_s10  ;;  %p558_p2 = pneg %p695_p0 }
  0x23   : > { %p563_p5 = scmp.lt.u32.totalorder %s556_s10, %s957_s2 }
  0x24   : > { %p559_p3 = pnand %p558_p2, %p557_p1 }
  0x26   : > { %p560_p4 = pneg %p559_p3 }
  0x28   : > { %p565_p6 = pnand %p563_p5, %p560_p4 }
  0x2a   : > { %568 = shalt.err (!%p565_p6)
}
  0x2b   : > { %s569_s15 = scalar_lea.vmem %s105_s5, 256  ;;  %p577_p13 = scmp.lt.s32.totalorder %s105_s5, %s105_s5 }
  0x2c   : > { %p570_p7 = scmp.ne.s32.totalorder %s105_s5, %s569_s15  ;;  %p578_p10 = scmp.lt.s32.totalorder %s569_s15, %s569_s15 }
  0x2e   : > { %p572_p8 = pnand %p570_p7, %p558_p2  ;;  %p579_p12 = por %p578_p10, %p577_p13 }
  0x30   : > { %p573_p9 = pneg %p572_p8 }
  0x32   : > { %p580_p11 = pnand %p579_p12, %p573_p9 }
  0x34   : > { %583 = shalt.err (!%p580_p11)
}
  0x35   : > { %s631_s16 = smov 128   ;;  %s632_s17 = smov 8  }
  0x36   : > { %514 = dma.hbm_to_vmem [thread:$0]  (!%p695_p0), %s957_s2, 256, %s105_s5, [#allocation8], %s631_s16, %s631_s16, %s632_s17  }
  0x37   : > { %p958_p1 = scmp.ne.s32.totalorder %s955_s6, 0 }
  0x38   : > { %p959_p3 = scmp.eq.s32.totalorder (!%p958_p1), %s681_s1, 0 }
  0x39   : > { %123 = sbr.rel (%p958_p1) target bundleno = 359 (0x167), region = 28 }
  0x40   : > { %617 = dma.done.wait (%p959_p3), [#allocation8], 256   ;;  %p960_p2 = pmov %p959_p3 }
  0x41   : > { %s722_s20 = sshll.u32 %s681_s1, 3  ;;  %p961_p10 = scmp.ne.s32.totalorder %s681_s1, 0 }
  0x42   : > { %619 = vsyncadd (%p960_p2), [#allocation8], 4294967040  ;;  %vm140_vm0 = vcmask (!%p961_p10), 0   ;;  %v633_v0 = vmov (!%p961_p10), 0.0  }
  0x43   : > { %139 = sbr.rel (%p961_p10) target bundleno = 74 (0x4a), region = 36  ;;  %141 = vst.msk [vmem:[#allocation10] sm:$0x1] (!%p961_p10), %vm140_vm0, %v633_v0 }
  0x4a PF: > { %s727_s21 = smul.u32 24, %s681_s1  ;;  %s169_s22 = sadd.s32 1, %s722_s20  ;;  %vm388_vm2 = vcmask 0  }
  0x4b   : > { %s730_s23 = smul.u32 3, %s169_s22  ;;  %s197_s24 = sadd.s32 2, %s722_s20 }
  0x4c   : > { %s143_s25 = sld [smem:[#allocation5 + %s727_s21]]  ;;  %s947_s26 = sadd.s32 1, %s727_s21 }
  0x4d   : > { %s147_s27 = sld [smem:[#allocation5 + %s947_s26]]  ;;  %s946_s28 = sadd.s32 2, %s727_s21 }
  0x4e   : > { %s151_s29 = sld [smem:[#allocation5 + %s946_s28]]  ;;  %s943_s5 = sadd.s32 1, %s730_s23 }
  0x4f   : > { %s171_s30 = sld [smem:[#allocation5 + %s730_s23]]  ;;  %s942_s6 = sadd.s32 2, %s730_s23 }
  0x50   : > { %s175_s7 = sld [smem:[#allocation5 + %s943_s5]]  ;;  %s747_s9 = smul.u32 3, %s197_s24 }
  0x51   : > { %s179_s8 = sld [smem:[#allocation5 + %s942_s6]]  ;;  %s225_s10 = sadd.s32 3, %s722_s20 }
  0x52   : > { %s750_s11 = smul.u32 3, %s225_s10  ;;  %s144_s12 = scalar_lea.vmem [#allocation7], %s143_s25 }
  0x53   : > { %v145_v1 = vld [vmem:[%s144_s12] sm:$0x1]  ;;  %s148_s15 = scalar_lea.vmem %s933_s3, %s147_s27  ;;  %s199_s16 = sld [smem:[#allocation5 + %s747_s9]] }
  0x54   : > { %v149_v2 = vld [vmem:[%s148_s15] sm:$0x1]  ;;  %s152_s17 = scalar_lea.vmem [#allocation7], %s151_s29  ;;  %s941_s19 = sadd.s32 1, %s747_s9 }
  0x55   : > { %v153_v3 = vld [vmem:[%s152_s17] sm:$0x1]  ;;  %v154_v4 = vmul.f32 %v149_v2, %v145_v1  ;;  %s172_s18 = scalar_lea.vmem [#allocation7], %s171_s30  ;;  %s939_s22 = sadd.s32 2, %s747_s9 }
  0x56   : > { %v173_v5 = vld [vmem:[%s172_s18] sm:$0x1]  ;;  %s176_s27 = scalar_lea.vmem %s933_s3, %s175_s7  ;;  %s203_s29 = sld [smem:[#allocation5 + %s941_s19]] }
  0x57   : > { %v155_v6 = vmul.f32 %v154_v4, %v153_v3  ;;  %v177_v7 = vld [vmem:[%s176_s27] sm:$0x1]  ;;  %s180_s10 = scalar_lea.vmem [#allocation7], %s179_s8  ;;  %s207_s30 = sld [smem:[#allocation5 + %s939_s22]] }
  0x58   : > { %v181_v8 = vld [vmem:[%s180_s10] sm:$0x1]  ;;  %v182_v9 = vmul.f32 %v177_v7, %v173_v5  ;;  %s227_s12 = sld [smem:[#allocation5 + %s750_s11]]  ;;  %s938_s13 = sadd.s32 1, %s750_s11 }
  0x59   : > { %156 = vst [vmem:[#allocation2] sm:$0x1] %v155_v6  ;;  %s231_s14 = sld [smem:[#allocation5 + %s938_s13]]  ;;  %s940_s15 = sadd.s32 2, %s750_s11 }
  0x5a   : > { %v183_v10 = vmul.f32 %v182_v9, %v181_v8  ;;  %s253_s17 = sadd.s32 4, %s722_s20  ;;  %s235_s7 = sld [smem:[#allocation5 + %s940_s15]] }
  0x5b   : > { %s773_s18 = smul.u32 3, %s253_s17  ;;  %s200_s8 = scalar_lea.vmem [#allocation7], %s199_s16 }
  0x5c   : > { %184 = vst [vmem:[#allocation2 + $0x1] sm:$0x1] %v183_v10  ;;  %v201_v11 = vld [vmem:[%s200_s8] sm:$0x1]  ;;  %s281_s24 = sadd.s32 5, %s722_s20  ;;  %s309_s25 = sadd.s32 6, %s722_s20 }
  0x5d   : > { %s204_s13 = scalar_lea.vmem %s933_s3, %s203_s29  ;;  %s208_s22 = scalar_lea.vmem [#allocation7], %s207_s30 }
  0x5e   : > { %v205_v12 = vld [vmem:[%s204_s13] sm:$0x1]  ;;  %s255_s17 = sld [smem:[#allocation5 + %s773_s18]]  ;;  %s228_s15 = scalar_lea.vmem [#allocation7], %s227_s12 }
  0x5f   : > { %v209_v13 = vld [vmem:[%s208_s22] sm:$0x1]  ;;  %v210_v14 = vmul.f32 %v205_v12, %v201_v11  ;;  %s232_s16 = scalar_lea.vmem %s933_s3, %s231_s14  ;;  %s945_s8 = sadd.s32 1, %s773_s18 }
  0x60   : > { %v229_v15 = vld [vmem:[%s228_s15] sm:$0x1]  ;;  %s259_s5 = sld [smem:[#allocation5 + %s945_s8]]  ;;  %s944_s27 = sadd.s32 2, %s773_s18 }
  0x61   : > { %v233_v16 = vld [vmem:[%s232_s16] sm:$0x1]  ;;  %v211_v17 = vmul.f32 %v210_v14, %v209_v13  ;;  %s263_s29 = sld [smem:[#allocation5 + %s944_s27]]  ;;  %s236_s22 = scalar_lea.vmem [#allocation7], %s235_s7 }
  0x62   : > { %v238_v18 = vmul.f32 %v233_v16, %v229_v15  ;;  %v237_v19 = vld [vmem:[%s236_s22] sm:$0x1]  ;;  %s790_s30 = smul.u32 3, %s281_s24  ;;  %s337_s6 = sadd.s32 7, %s722_s20 }
  0x63   : > { %212 = vst [vmem:[#allocation2 + $0x2] sm:$0x1] %v211_v17  ;;  %s793_s19 = smul.u32 3, %s309_s25  ;;  %s796_s12 = sld [smem:[#allocation6 + %s727_s21]] }
  0x64   : > { %v239_v20 = vmul.f32 %v238_v18, %v237_v19  ;;  %s283_s13 = sld [smem:[#allocation5 + %s790_s30]]  ;;  %s256_s14 = scalar_lea.vmem [#allocation7], %s255_s17  ;;  %v371_v19 = vlaneseq }
  0x65   : > { %v257_v21 = vld [vmem:[%s256_s14] sm:$0x1]  ;;  %s951_s15 = sadd.s32 1, %s790_s30  ;;  %s950_s7 = sadd.s32 2, %s790_s30 }
  0x66   : > { %240 = vst [vmem:[#allocation2 + $0x3] sm:$0x1] %v239_v20  ;;  %s260_s16 = scalar_lea.vmem %s933_s3, %s259_s5  ;;  %s287_s25 = sld [smem:[#allocation5 + %s951_s15]] }
  0x67   : > { %v261_v22 = vld [vmem:[%s260_s16] sm:$0x1]  ;;  %s291_s22 = sld [smem:[#allocation5 + %s950_s7]]  ;;  %s264_s27 = scalar_lea.vmem [#allocation7], %s263_s29 }
  0x68   : > { %v265_v23 = vld [vmem:[%s264_s27] sm:$0x1]  ;;  %v266_v24 = vmul.f32 %v261_v22, %v257_v21  ;;  %s311_s8 = sld [smem:[#allocation5 + %s793_s19]]  ;;  %s948_s28 = sadd.s32 1, %s793_s19  ;;  %v372_v21 = vshrl.u32 %v371_v19, 7  ;;  %v373_v22 = vstv %s722_s20 }
  0x69   : > { %s315_s17 = sld [smem:[#allocation5 + %s948_s28]]  ;;  %s949_s14 = sadd.s32 2, %s793_s19 }
  0x6a   : > { %v267_v25 = vmul.f32 %v266_v24, %v265_v23  ;;  %s319_s26 = sld [smem:[#allocation5 + %s949_s14]]  ;;  %s284_s2 = scalar_lea.vmem [#allocation7], %s283_s13  ;;  %v374_v23 = vadd.s32 %v373_v22, %v372_v21 }
  0x6b   : > { %v285_v26 = vld [vmem:[%s284_s2] sm:$0x1]  ;;  %s815_s5 = smul.u32 3, %s337_s6  ;;  %s962_s10 = sadd.s32 1, %s727_s21 }
  0x6c   : > { %268 = vst [vmem:[#allocation2 + $0x4] sm:$0x1] %v267_v25  ;;  %s288_s24 = scalar_lea.vmem %s933_s3, %s287_s25  ;;  %s160_s16 = sld [smem:[#allocation6 + %s962_s10]]  ;;  %vm375_vm1 = vcmp.lt.s32.totalorder %v374_v23, 20 }
  0x6d   : > { %v289_v27 = vld [vmem:[%s288_s24] sm:$0x1]  ;;  %s339_s28 = sld [smem:[#allocation5 + %s815_s5]]  ;;  %s292_s14 = scalar_lea.vmem [#allocation7], %s291_s22 }
  0x6e   : > { %v293_v28 = vld [vmem:[%s292_s14] sm:$0x1]  ;;  %v294_v29 = vmul.f32 %v289_v27, %v285_v26  ;;  %s953_s2 = sadd.s32 1, %s815_s5  ;;  %s312_s6 = scalar_lea.vmem [#allocation7], %s311_s8 }
  0x6f   : > { %v313_v30 = vld [vmem:[%s312_s6] sm:$0x1]  ;;  %s316_s15 = scalar_lea.vmem %s933_s3, %s315_s17  ;;  %s343_s25 = sld [smem:[#allocation5 + %s953_s2]] }
  0x70   : > { %v295_v31 = vmul.f32 %v294_v29, %v293_v28  ;;  %v317_v32 = vld [vmem:[%s316_s15] sm:$0x1]  ;;  %s952_s29 = sadd.s32 2, %s815_s5  ;;  %s320_s27 = scalar_lea.vmem [#allocation7], %s319_s26 }
  0x71   : > { %v321_v33 = vld [vmem:[%s320_s27] sm:$0x1]  ;;  %v322_v34 = vmul.f32 %v317_v32, %v313_v30  ;;  %s347_s22 = sld [smem:[#allocation5 + %s952_s29]]  ;;  %s963_s8 = sadd.s32 2, %s727_s21 }
  0x72   : > { %s163_s14 = sld [smem:[#allocation6 + %s963_s8]]  ;;  %296 = vst [vmem:[#allocation2 + $0x5] sm:$0x1] %v295_v31  ;;  %s158_s24 = scalar_lea.vmem [#allocation7], %s796_s12 }
  0x73   : > { %v159_v35 = vld [vmem:[%s158_s24] sm:$0x1]  ;;  %s161_s15 = scalar_lea.vmem %s933_s3, %s160_s16  ;;  %s185_s10 = sld [smem:[#allocation6 + %s730_s23]]  ;;  %v323_v36 = vmul.f32 %v322_v34, %v321_v33  ;;  %v380_v34 = vld [vmem:[#allocation10] sm:$0x1] }
  0x74   : > { %v162_v37 = vld [vmem:[%s161_s15] sm:$0x1]  ;;  %s964_s26 = sadd.s32 1, %s730_s23  ;;  %s340_s13 = scalar_lea.vmem [#allocation7], %s339_s28 }
  0x75   : > { %s188_s6 = sld [smem:[#allocation6 + %s964_s26]]  ;;  %v341_v38 = vld [vmem:[%s340_s13] sm:$0x1]  ;;  %s965_s21 = sadd.s32 2, %s730_s23  ;;  %324 = vst [vmem:[#allocation2 + $0x6] sm:$0x1] %v323_v36  ;;  %v166_v39 = vmul.f32 %v162_v37, %v159_v35 }
  0x76   : > { %s191_s27 = sld [smem:[#allocation6 + %s965_s21]]  ;;  %s344_s24 = scalar_lea.vmem %s933_s3, %s343_s25 }
  0x77   : > { %s213_s8 = sld [smem:[#allocation6 + %s747_s9]]  ;;  %s966_s7 = sadd.s32 1, %s747_s9  ;;  %v345_v40 = vld [vmem:[%s344_s24] sm:$0x1] }
  0x78   : > { %s216_s16 = sld [smem:[#allocation6 + %s966_s7]]  ;;  %s967_s17 = sadd.s32 2, %s747_s9  ;;  %v350_v41 = vmul.f32 %v345_v40, %v341_v38 }
  0x79   : > { %s219_s15 = sld [smem:[#allocation6 + %s967_s17]]  ;;  %s348_s28 = scalar_lea.vmem [#allocation7], %s347_s22 }
  0x7a   : > { %s852_s2 = sld [smem:[#allocation6 + %s750_s11]]  ;;  %v349_v42 = vld [vmem:[%s348_s28] sm:$0x1]  ;;  %s164_s23 = scalar_lea.vmem [#allocation7], %s163_s14 }
  0x7b   : > { %v165_v43 = vld [vmem:[%s164_s23] sm:$0x1]  ;;  %s968_s26 = sadd.s32 1, %s750_s11  ;;  %v351_v44 = vmul.f32 %v350_v41, %v349_v42  ;;  %s186_s25 = scalar_lea.vmem [#allocation7], %s185_s10 }
  0x7c   : > { %s856_s13 = sld [smem:[#allocation6 + %s968_s26]]  ;;  %v167_v45 = vmul.f32 %v166_v39, %v165_v43  ;;  %v187_v46 = vld [vmem:[%s186_s25] sm:$0x1]  ;;  %s189_s9 = scalar_lea.vmem %s933_s3, %s188_s6 }
  0x7d   : > { %s969_s12 = sadd.s32 2, %s750_s11  ;;  %v190_v47 = vld [vmem:[%s189_s9] sm:$0x1]  ;;  %352 = vst [vmem:[#allocation2 + $0x7] sm:$0x1] %v351_v44  ;;  %s192_s22 = scalar_lea.vmem [#allocation7], %s191_s27 }
  0x7e   : > { %s247_s24 = sld [smem:[#allocation6 + %s969_s12]]  ;;  %168 = vst [vmem:[#allocation3] sm:$0x1] %v167_v45  ;;  %v193_v48 = vld [vmem:[%s192_s22] sm:$0x1]  ;;  %v194_v49 = vmul.f32 %v190_v47, %v187_v46  ;;  %s214_s14 = scalar_lea.vmem [#allocation7], %s213_s8 }
  0x7f   : > { %v215_v50 = vld [vmem:[%s214_s14] sm:$0x1]  ;;  %s217_s17 = scalar_lea.vmem %s933_s3, %s216_s16  ;;  %s269_s11 = sld [smem:[#allocation6 + %s773_s18]] }
  0x80   : > { %v218_v51 = vld [vmem:[%s217_s17] sm:$0x1]  ;;  %v195_v52 = vmul.f32 %v194_v49, %v193_v48  ;;  %s220_s6 = scalar_lea.vmem [#allocation7], %s219_s15  ;;  %s242_s27 = scalar_lea.vmem [#allocation7], %s852_s2 }
  0x81   : > { %v221_v53 = vld [vmem:[%s220_s6] sm:$0x1]  ;;  %v222_v54 = vmul.f32 %v218_v51, %v215_v50  ;;  %s970_s28 = sadd.s32 1, %s773_s18  ;;  %s971_s8 = sadd.s32 2, %s773_s18 }
  0x82   : > { %v243_v55 = vld [vmem:[%s242_s27] sm:$0x1]  ;;  %s272_s23 = sld [smem:[#allocation6 + %s970_s28]]  ;;  %s245_s16 = scalar_lea.vmem %s933_s3, %s856_s13  ;;  %196 = vst [vmem:[#allocation3 + $0x1] sm:$0x1] %v195_v52 }
  0x83   : > { %s275_s26 = sld [smem:[#allocation6 + %s971_s8]]  ;;  %v223_v56 = vmul.f32 %v222_v54, %v221_v53  ;;  %v246_v57 = vld [vmem:[%s245_s16] sm:$0x1]  ;;  %s972_s15 = sadd.s32 1, %s790_s30 }
  0x84   : > { %s297_s21 = sld [smem:[#allocation6 + %s790_s30]]  ;;  %s248_s12 = scalar_lea.vmem [#allocation7], %s247_s24  ;;  %v250_v59 = vmul.f32 %v246_v57, %v243_v55  ;;  %v365_v60 = vld [vmem:[#allocation2] sm:$0xff] }
  0x85   : > { %s300_s9 = sld [smem:[#allocation6 + %s972_s15]]  ;;  %v249_v58 = vld [vmem:[%s248_s12] sm:$0x1]  ;;  %s973_s2 = sadd.s32 2, %s790_s30  ;;  %224 = vst [vmem:[#allocation3 + $0x2] sm:$0x1] %v223_v56  ;;  %366 = vadd.xlane.f32.xlu0 %v365_v60 }
  0x86   : > { %s303_s22 = sld [smem:[#allocation6 + %s973_s2]]  ;;  %s974_s14 = sadd.s32 1, %s793_s19  ;;  %v251_v61 = vmul.f32 %v250_v59, %v249_v58 }
  0x87   : > { %s325_s18 = sld [smem:[#allocation6 + %s793_s19]]  ;;  %s270_s13 = scalar_lea.vmem [#allocation7], %s269_s11 }
  0x88   : > { %s328_s10 = sld [smem:[#allocation6 + %s974_s14]]  ;;  %v271_v62 = vld [vmem:[%s270_s13] sm:$0x1]  ;;  %s975_s7 = sadd.s32 2, %s793_s19  ;;  %252 = vst [vmem:[#allocation3 + $0x3] sm:$0x1] %v251_v61 }
  0x89   : > { %s331_s17 = sld [smem:[#allocation6 + %s975_s7]]  ;;  %s273_s28 = scalar_lea.vmem %s933_s3, %s272_s23 }
  0x8a   : > { %s353_s6 = sld [smem:[#allocation6 + %s815_s5]]  ;;  %v274_v63 = vld [vmem:[%s273_s28] sm:$0x1]  ;;  %s276_s30 = scalar_lea.vmem [#allocation7], %s275_s26 }
  0x8b   : > { %v277_v0 = vld [vmem:[%s276_s30] sm:$0x1]  ;;  %s976_s8 = sadd.s32 1, %s815_s5  ;;  %v278_v1 = vmul.f32 %v274_v63, %v271_v62  ;;  %s298_s29 = scalar_lea.vmem [#allocation7], %s297_s21 }
  0x8c   : > { %s356_s25 = sld [smem:[#allocation6 + %s976_s8]]  ;;  %v299_v2 = vld [vmem:[%s298_s29] sm:$0x1]  ;;  %s301_s19 = scalar_lea.vmem %s933_s3, %s300_s9 }
  0x8d   : > { %s977_s15 = sadd.s32 2, %s815_s5  ;;  %v302_v3 = vld [vmem:[%s301_s19] sm:$0x1]  ;;  %v279_v4 = vmul.f32 %v278_v1, %v277_v0  ;;  %s304_s2 = scalar_lea.vmem [#allocation7], %s303_s22 }
  0x8e   : > { %s359_s12 = sld [smem:[#allocation6 + %s977_s15]]  ;;  %v305_v5 = vld [vmem:[%s304_s2] sm:$0x1]  ;;  %v306_v6 = vmul.f32 %v302_v3, %v299_v2  ;;  %s326_s23 = scalar_lea.vmem [#allocation7], %s325_s18 }
  0x8f   : > { %v327_v7 = vld [vmem:[%s326_s23] sm:$0x1]  ;;  %s329_s13 = scalar_lea.vmem %s933_s3, %s328_s10  ;;  %280 = vst [vmem:[#allocation3 + $0x4] sm:$0x1] %v279_v4  ;;  %s332_s21 = scalar_lea.vmem [#allocation7], %s331_s17 }
  0x90   : > { %v330_v8 = vld [vmem:[%s329_s13] sm:$0x1]  ;;  %v307_v9 = vmul.f32 %v306_v6, %v305_v5  ;;  %s354_s9 = scalar_lea.vmem [#allocation7], %s353_s6  ;;  %p498_p11 = scmp.ne.s32.totalorder %s681_s1, 2 }
  0x91   : > { %v333_v10 = vld [vmem:[%s332_s21] sm:$0x1]  ;;  %v334_v11 = vmul.f32 %v330_v8, %v327_v7 }
  0x92   : > { %v355_v12 = vld [vmem:[%s354_s9] sm:$0x1]  ;;  %s357_s22 = scalar_lea.vmem %s933_s3, %s356_s25  ;;  %308 = vst [vmem:[#allocation3 + $0x5] sm:$0x1] %v307_v9 }
  0x93   : > { %v335_v13 = vmul.f32 %v334_v11, %v333_v10  ;;  %v358_v14 = vld [vmem:[%s357_s22] sm:$0x1] }
  0x94   : > { %s360_s18 = scalar_lea.vmem [#allocation7], %s359_s12  ;;  %v362_v16 = vmul.f32 %v358_v14, %v355_v12 }
  0x95   : > { %v361_v15 = vld [vmem:[%s360_s18] sm:$0x1]  ;;  %336 = vst [vmem:[#allocation3 + $0x6] sm:$0x1] %v335_v13 }
  0x96   : > { %v363_v17 = vmul.f32 %v362_v16, %v361_v15 }
  0x98   : > { %364 = vst [vmem:[#allocation3 + $0x7] sm:$0x1] %v363_v17 }
  0x9f   : > { %v368_v18 = vld [vmem:[#allocation3] sm:$0xff] }
  0xa0   : > { %369 = vadd.xlane.f32.xlu0 %v368_v18 }
 0x112   : > { %v367_v20 = vpop.xlane.xlu0 %366 }
 0x12d   : > { %v370_v24 = vpop.xlane.xlu0 %369 }
 0x12e   : > { %v376_v25 = vsub.f32 %v367_v20, %v370_v24 }
 0x130   : > { %v377_v26 = vadd.f32 1.0, %v376_v25 }
 0x132   : > { %v378_v27 = vmax.f32 %v377_v26, 0.0 }
 0x134   : > { %v379_v28 = vsel %vm375_vm1, %v378_v27, 0.0 }
 0x135   : > { %v381_v29 = vrot.slane %v379_v28, 4 }
 0x137   : > { %v382_v30 = vadd.f32 %v381_v29, %v379_v28 }
 0x139   : > { %v383_v31 = vrot.slane %v382_v30, 2 }
 0x13b   : > { %v384_v32 = vadd.f32 %v383_v31, %v382_v30 }
 0x13d   : > { %v385_v33 = vrot.slane %v384_v32, 1  ;;  %393 = sbr.rel (%p498_p11) target bundleno = 334 (0x14e), region = 40 }
 0x13f   : > { %v386_v35 = vadd.f32 %v385_v33, %v384_v32 }
 0x141   : > { %v387_v36 = vadd.f32 %v386_v35, %v380_v34 }
 0x143   : > { %389 = vst.msk [vmem:[#allocation10] sm:$0x1] %vm388_vm2, %v387_v36 }
 0x14a   : > { %v394_v37 = vld [vmem:[#allocation10] sm:$0x1] }
 0x14b   : > { %v395_v38 = vmul.f32 0.05, %v394_v37 }
 0x14d   : > { %396 = vst.msk [vmem:[#allocation10] sm:$0x1] %vm388_vm2, %v395_v38 }
 0x14e PF: > { %p517_p12 = scmp.eq.s32.totalorder %s681_s1, 2  ;;  %s634_s20 = smov [#allocation10]  }
 0x14f   : > { %s404_s10 = sshll.u32 %s634_s20, 4  ;;  %s405_s10 = int_to_ptr.vmem [resolvable:$true] %s404_s10 }
 0x150   : > { %s584_s17 = scalar_lea.vmem %s405_s10, 16  ;;  %s590_s6 = scalar_lea.vmem %s405_s10, 32 }
 0x151   : > { %p585_p0 = scmp.ne.s32.totalorder %s405_s10, %s584_s17  ;;  %p591_p6 = scmp.lt.s32.totalorder %s405_s10, %s405_s10 }
 0x152   : > { %p592_p7 = scmp.lt.s32.totalorder %s590_s6, %s584_s17 }
 0x153   : > { %p586_p4 = pnand %p585_p0, %p517_p12 }
 0x154   : > { %p593_p8 = por %p592_p7, %p591_p6 }
 0x155   : > { %p587_p5 = pneg %p586_p4 }
 0x157   : > { %p594_p9 = pnand %p593_p8, %p587_p5 }
 0x159   : > { %597 = shalt.err (!%p594_p9)
}
 0x15a   : > { %s598_s28 = scalar_lea.hbm %s934_s4, 16 }
 0x15b   : > { %p599_p13 = scmp.ne.s32.totalorder %s934_s4, %s598_s28  ;;  %p604_p2 = scmp.lt.u32.totalorder %s598_s28, %s934_s4 }
 0x15d   : > { %p600_p1 = pnand %p599_p13, %p517_p12 }
 0x15f   : > { %p601_p3 = pneg %p600_p1 }
 0x161   : > { %p606_p10 = pnand %p604_p2, %p601_p3 }
 0x163   : > { %609 = shalt.err (!%p606_p10)
}
 0x164   : > { %508 = dma.vmem_to_hbm [thread:$0]  (%p517_p12), %s405_s10, 16, %s934_s4, [#allocation9]  }
 0x165   : > { %621 = dma.done.wait (%p517_p12), [#allocation9], 16  }
 0x166   : > { %623 = vsyncadd (%p517_p12), [#allocation9], 4294967280 }
 0x167 PF: > { %s24_s0 = sadd.s32 1, %s626_s0  }
 0x168   : > { %p21_p11 = scmp.ge.s32.totalorder %s24_s0, 5  }
 0x16a   :  { %23 = sbr.rel (!%p21_p11) target bundleno = 24 (0x18), region = 113 }
 0x171   :  { %417 = vsyncpa [#allocation8], 1 }
 0x172   :  { %419 = vsyncpa [#allocation8 + $0x1], 1 }
 0x173   :  { %420 = vsyncpa [#allocation9], 1 }
 0x174   :  { %422 = vsyncpa [#allocation9 + $0x1], 1 }

</bundles_post_ra>
